<compile_context>
chip_gen: v5e
topology: v5e:2x2
jax: 0.10.0
libtpu: 0.0.40
codegen_flags: <defaults>
</compile_context>

<pallas_src>
import math

import jax
import jax.numpy as jnp
from jax.experimental import pallas as pl
from jax.experimental.pallas import tpu as pltpu


def _round_up(n, m):
    return ((n + m - 1) // m) * m


def _block_diag(w, pack):
    """kron(I_pack, w): (a, b) -> (pack*a, pack*b) block-diagonal."""
    if pack == 1:
        return w
    return jnp.kron(jnp.eye(pack, dtype=w.dtype), w)


def _vmem_capacity_bytes():
    """Per-core VMEM capacity; conservative fallback if the query fails."""
    try:
        cap = getattr(pltpu.get_tpu_info(), "vmem_capacity_bytes", None)
        if cap:
            return int(cap)
    except Exception:
        pass
    return 64 << 20  # v7x per-TensorCore size (smallest of v5e/v6e/v7x)


def _se_kernel(x_ref, w1_ref, w2_ref, o_ref):
    # x_ref:  (tm, Cp)  packed row-tile of the flattened input
    # w1_ref: (Cp, Hp)  block-diagonal first linear (transposed PyTorch weight)
    # w2_ref: (Hp, Cp)  block-diagonal second linear (transposed PyTorch weight)
    # o_ref:  (tm, Cp)
    x = x_ref[...]
    h = jnp.dot(x, w1_ref[...], preferred_element_type=jnp.float32)
    h = jnp.maximum(h, 0.0)                                    # ReLU
    y = jnp.dot(h.astype(w2_ref.dtype), w2_ref[...],
                preferred_element_type=jnp.float32)
    # Sigmoid as a single EUP transcendental: sigmoid(y) = 0.5*tanh(0.5*y)+0.5
    y = 0.5 * jnp.tanh(0.5 * y) + 0.5
    # Gate in the input dtype (bf16-native VPU on v6e/v7x; f32 path otherwise).
    o_ref[...] = (x * y.astype(x.dtype)).astype(o_ref.dtype)


def se_layer(x, w1, w2, *, tm=8192):
    """SELayer forward.

    x:  (..., C)
    w1: (H, C)  -- PyTorch nn.Linear(C, H).weight   (H = C // reduction)
    w2: (C, H)  -- PyTorch nn.Linear(H, C).weight
    """
    orig_shape = x.shape
    C = orig_shape[-1]
    H = w1.shape[0]
    assert w1.shape == (H, C) and w2.shape == (C, H)

    x2d = x.reshape(-1, C)
    M = x2d.shape[0]
    dt_bytes = jnp.dtype(x.dtype).itemsize

    # --- lane packing: fold rows so the last (lane) dim is a multiple of 128 ---
    pack = 128 // math.gcd(C, 128)
    # only pack if the block-diagonal weights stay small (they grow ~pack^2)
    if pack > 1 and 2 * (pack * C) * (pack * H) * dt_bytes > (4 << 20):
        pack = 1  # fall back to lane-sparse (correct, just slower stores)
    Cp = pack * C
    Hp = pack * H

    w1t = _block_diag(w1.T, pack).astype(x.dtype)  # (Cp, Hp)
    w2t = _block_diag(w2.T, pack).astype(x.dtype)  # (Hp, Cp)
    w_bytes = (Cp * Hp + Hp * Cp) * dt_bytes

    # --- pad only to a multiple of `pack` (<= pack-1 rows, usually a no-op).
    # The ragged last *tile* is handled by Pallas edge masking instead of a
    # full-array pad: rows are fully independent, OOB reads are garbage rows
    # whose stores are masked, so correctness is preserved with no extra
    # HBM read+write pass over x.
    M_pad = _round_up(M, pack)
    if M_pad != M:
        x2d = jnp.pad(x2d, ((0, M_pad - M), (0, 0)))
    Mr = M_pad // pack
    xp = x2d.reshape(Mr, Cp)  # row-major reshape: free

    # --- tile-size selection (packed rows), sized from this chip's VMEM ---
    sub = 16 if x.dtype == jnp.bfloat16 else 8          # sublane granularity
    vmem_cap = _vmem_capacity_bytes()                    # 128 MiB v5e/v6e, 64 MiB v7x
    # keep the 4 live tiles (input + output, double-buffered) under ~half VMEM
    tile_budget = (vmem_cap // 2) // 4
    tm_cap = max(sub, (tile_budget // (Cp * dt_bytes)) // sub * sub)

    if Mr <= sub:
        tm_eff = Mr                                      # single full-extent block
    else:
        tm_eff = min(_round_up(tm, sub), _round_up(Mr, sub), tm_cap)
        # Guarantee several grid steps once there is enough work: keeps v7x's
        # second TensorCore busy and the DMA pipeline double-buffered.
        if Mr >= 4096:
            tm_eff = min(tm_eff, _round_up(pl.cdiv(Mr, 4), sub))
        elif Mr >= 1024:
            tm_eff = min(tm_eff, _round_up(pl.cdiv(Mr, 2), sub))
        tm_eff = max(tm_eff, sub)
    grid = pl.cdiv(Mr, tm_eff)

    # --- VMEM budget (generation-aware) + cost estimate ---
    tile_bytes = tm_eff * Cp * dt_bytes
    vmem_bytes = 4 * tile_bytes + 2 * w_bytes + (2 << 20)
    vmem_bytes = int(min(max(vmem_bytes, 16 << 20), (vmem_cap * 3) // 4))

    cost = pl.CostEstimate(
        flops=4 * M * C * H + 2 * M * C,
        transcendentals=M * C,
        bytes_accessed=2 * M * C * dt_bytes + w_bytes,
    )

    out = pl.pallas_call(
        _se_kernel,
        out_shape=jax.ShapeDtypeStruct((Mr, Cp), x.dtype),
        grid_spec=pltpu.PrefetchScalarGridSpec(
            num_scalar_prefetch=0,
            grid=(grid,),
            in_specs=[
                pl.BlockSpec((tm_eff, Cp), lambda i: (i, 0)),  # packed x row-tile
                pl.BlockSpec((Cp, Hp), lambda i: (0, 0)),      # w1 (VMEM-resident)
                pl.BlockSpec((Hp, Cp), lambda i: (0, 0)),      # w2 (VMEM-resident)
            ],
            out_specs=pl.BlockSpec((tm_eff, Cp), lambda i: (i, 0)),
        ),
        compiler_params=pltpu.CompilerParams(
            dimension_semantics=("parallel",),
            vmem_limit_bytes=vmem_bytes,
        ),
        cost_estimate=cost,
    )(xp, w1t, w2t)

    out = out.reshape(M_pad, C)
    if M_pad != M:
        out = out[:M]
    return out.reshape(orig_shape)


def se_layer_ref(x, w1, w2):
    """Pure-JAX reference matching the PyTorch module exactly."""
    h = jnp.maximum(x @ w1.T, 0.0)
    y = jax.nn.sigmoid(h @ w2.T)
    return x * y


if __name__ == "__main__":
    # Small shapes consistent with the module: x is (batch, seq, channel),
    # channel=64, reduction=16 -> hidden=4.
    B, S, C, reduction = 2, 8, 64, 16
    H = C // reduction

    key = jax.random.PRNGKey(0)
    kx, kw1, kw2, kx2, kx3 = jax.random.split(key, 5)
    x = jax.random.normal(kx, (B, S, C), dtype=jnp.float32)
    w1 = jax.random.normal(kw1, (H, C), dtype=jnp.float32) * 0.1  # nn.Linear(C,H).weight
    w2 = jax.random.normal(kw2, (C, H), dtype=jnp.float32) * 0.1  # nn.Linear(H,C).weight

    out = jax.block_until_ready(se_layer(x, w1, w2))
    ref = se_layer_ref(x, w1, w2)
    assert out.shape == x.shape
    assert jnp.allclose(out, ref, atol=1e-5, rtol=1e-5), "mismatch vs reference"

    # Ragged leading-dim product (exercises the pad-to-pack path).
    x2 = jax.random.normal(kx2, (3, 5, C), dtype=jnp.float32)
    out2 = jax.block_until_ready(se_layer(x2, w1, w2))
    ref2 = se_layer_ref(x2, w1, w2)
    assert out2.shape == x2.shape
    assert jnp.allclose(out2, ref2, atol=1e-5, rtol=1e-5), "mismatch (ragged rows)"

    # Multi-step grid with a ragged last tile (exercises Pallas edge masking):
    # M=35 packed rows -> Mr=18, tm=8 -> grid=3, last block partially OOB.
    x3 = jax.random.normal(kx3, (5, 7, C), dtype=jnp.float32)
    out3 = jax.block_until_ready(se_layer(x3, w1, w2, tm=8))
    ref3 = se_layer_ref(x3, w1, w2)
    assert out3.shape == x3.shape
    assert jnp.allclose(out3, ref3, atol=1e-5, rtol=1e-5), "mismatch (ragged tile)"

    print("KERNEL_OK")
</pallas_src>

<mosaic_0001>
module attributes {stable_mosaic.version = 11 : i64} {
  func.func @_se_kernel(%arg0: i32, %arg1: memref<8x128xf32, #tpu.memory_space<vmem>>, %arg2: memref<128x8xf32, #tpu.memory_space<vmem>>, %arg3: memref<8x128xf32, #tpu.memory_space<vmem>>, %arg4: memref<8x128xf32, #tpu.memory_space<vmem>>) attributes {dimension_semantics = [#tpu.dimension_semantics<parallel>], iteration_bounds = array<i64: 1>, scalar_prefetch = 0 : i64, scratch_operands = 0 : i64, tpu.core_type = #tpu.core_type<tc>, window_params = [{transform_indices = @transform_0, window_bounds = array<i64: 8, 128>}, {pipeline_mode = #tpu.pipeline_mode<synchronous>, transform_indices = @transform_1, window_bounds = array<i64: 128, 8>}, {pipeline_mode = #tpu.pipeline_mode<synchronous>, transform_indices = @transform_2, window_bounds = array<i64: 8, 128>}, {transform_indices = @transform_3, window_bounds = array<i64: 8, 128>}]} {
    %c0 = arith.constant 0 : index
    %c0_0 = arith.constant 0 : index
    %0 = vector.load %arg1[%c0, %c0_0] : memref<8x128xf32, #tpu.memory_space<vmem>>, vector<8x128xf32>
    %c0_1 = arith.constant 0 : index
    %c0_2 = arith.constant 0 : index
    %1 = vector.load %arg2[%c0_1, %c0_2] : memref<128x8xf32, #tpu.memory_space<vmem>>, vector<128x8xf32>
    %cst = arith.constant dense<0.000000e+00> : vector<8x8xf32>
    %2 = tpu.matmul %0, %1, %cst {dimension_numbers = #tpu.dot_dimension_numbers<[1], [0], [0], [1], [0, 0, 1, 1], [], []>} : vector<8x128xf32>, vector<128x8xf32>, vector<8x8xf32> -> vector<8x8xf32>
    %cst_3 = arith.constant 0.000000e+00 : f32
    %3 = vector.broadcast %cst_3 : f32 to vector<8x8xf32>
    %4 = arith.maximumf %2, %3 : vector<8x8xf32>
    %c0_4 = arith.constant 0 : index
    %c0_5 = arith.constant 0 : index
    %5 = vector.load %arg3[%c0_4, %c0_5] : memref<8x128xf32, #tpu.memory_space<vmem>>, vector<8x128xf32>
    %cst_6 = arith.constant dense<0.000000e+00> : vector<8x128xf32>
    %6 = tpu.matmul %4, %5, %cst_6 {dimension_numbers = #tpu.dot_dimension_numbers<[1], [0], [0], [1], [0, 0, 1, 1], [], []>} : vector<8x8xf32>, vector<8x128xf32>, vector<8x128xf32> -> vector<8x128xf32>
    %cst_7 = arith.constant 5.000000e-01 : f32
    %7 = vector.broadcast %cst_7 : f32 to vector<8x128xf32>
    %8 = arith.mulf %7, %6 : vector<8x128xf32>
    %9 = math.tanh %8 : vector<8x128xf32>
    %cst_8 = arith.constant 5.000000e-01 : f32
    %10 = vector.broadcast %cst_8 : f32 to vector<8x128xf32>
    %11 = arith.mulf %10, %9 : vector<8x128xf32>
    %cst_9 = arith.constant 5.000000e-01 : f32
    %12 = vector.broadcast %cst_9 : f32 to vector<8x128xf32>
    %13 = arith.addf %11, %12 : vector<8x128xf32>
    %14 = arith.mulf %0, %13 : vector<8x128xf32>
    %c0_10 = arith.constant 0 : index
    %c0_11 = arith.constant 0 : index
    %15 = vector.load %arg4[%c0_10, %c0_11] : memref<8x128xf32, #tpu.memory_space<vmem>>, vector<8x128xf32>
    tpu.vector_store %arg4[%c0_10, %c0_11], %14 {strides = array<i32>} : memref<8x128xf32, #tpu.memory_space<vmem>>, vector<8x128xf32>,
    return
  }
  func.func @transform_0(%arg0: i32) -> (i32, i32) {
    %c0_i32 = arith.constant 0 : i32
    %c0_i32_0 = arith.constant 0 : i32
    return %arg0, %c0_i32 : i32, i32
  }
  func.func @transform_1(%arg0: i32) -> (i32, i32) {
    %c0_i32 = arith.constant 0 : i32
    %c0_i32_0 = arith.constant 0 : i32
    %c0_i32_1 = arith.constant 0 : i32
    return %c0_i32, %c0_i32_0 : i32, i32
  }
  func.func @transform_2(%arg0: i32) -> (i32, i32) {
    %c0_i32 = arith.constant 0 : i32
    %c0_i32_0 = arith.constant 0 : i32
    %c0_i32_1 = arith.constant 0 : i32
    return %c0_i32, %c0_i32_0 : i32, i32
  }
  func.func @transform_3(%arg0: i32) -> (i32, i32) {
    %c0_i32 = arith.constant 0 : i32
    %c0_i32_0 = arith.constant 0 : i32
    return %arg0, %c0_i32 : i32, i32
  }
}

</mosaic_0001>

<bundles_post_ra>
// kernel: tpu_custom_call.1
= control target key start
LH: loop header
LB: loop body
LE: loop exit
PB: predicated region body
PF: predicated region fallthrough
CT: control target
= control target key end

     0   :  { %s208_s0 = inlined_call_operand.vmem [shape: f32[8,128], index: 0, kind: input, shape index: {}]   ;;  %s209_s1 = inlined_call_operand.vmem [shape: f32[128,8], index: 1, kind: input, shape index: {}]   ;;  %s210_s2 = inlined_call_operand.vmem [shape: f32[8,128], index: 2, kind: input, shape index: {}]   ;;  %s211_s3 = inlined_call_operand.hbm [shape: f32[8,128], index: 3, kind: output, shape index: {}]  }
   0x1   :  { %v31_v0 = vld [vmem:[%s209_s1 + $0x78] sm:$0xff]  ;;  %v30_v1 = vld [vmem:[%s209_s1 + $0x70] sm:$0xff]  ;;  %v29_v2 = vld [vmem:[%s209_s1 + $0x68] sm:$0xff] }
   0x2   :  { %32 = vmatpush.msra.mxu0 %v31_v0  ;;  %v28_v3 = vld [vmem:[%s209_s1 + $0x60] sm:$0xff] }
   0x4   :  { %33 = vmatpush.msra.mxu0 %v30_v1 }
   0x6   :  { %34 = vmatpush.msra.mxu0 %v29_v2 }
   0x7   :  { %8 = vsyncpa [#allocation3], 0  ;;  %v27_v4 = vld [vmem:[%s209_s1 + $0x58] sm:$0xff]  ;;  %v26_v5 = vld [vmem:[%s209_s1 + $0x50] sm:$0xff]  ;;  %vm54_vm0 = vcmask 64512   ;;  %s91_s23 = sshll.u32 %s211_s3, 4  ;;  %s92_s23 = int_to_ptr.hbm [resolvable:$true] %s91_s23 }
   0x8   :  { %35 = vmatpush.msra.mxu0 %v28_v3  ;;  %v25_v6 = vld [vmem:[%s209_s1 + $0x48] sm:$0xff]  ;;  %v24_v7 = vld [vmem:[%s209_s1 + $0x40] sm:$0xff]  ;;  %v23_v8 = vld [vmem:[%s209_s1 + $0x38] sm:$0xff] }
   0x9   :  { %v22_v9 = vld [vmem:[%s209_s1 + $0x30] sm:$0xff]  ;;  %v21_v10 = vld [vmem:[%s209_s1 + $0x28] sm:$0xff]  ;;  %v20_v11 = vld [vmem:[%s209_s1 + $0x20] sm:$0xff] }
   0xa   :  { %36 = vmatpush.msra.mxu0 %v27_v4  ;;  %v19_v12 = vld [vmem:[%s209_s1 + $0x18] sm:$0xff]  ;;  %v18_v13 = vld [vmem:[%s209_s1 + $0x10] sm:$0xff]  ;;  %v17_v14 = vld [vmem:[%s209_s1 + $0x8] sm:$0xff] }
   0xb   :  { %v16_v15 = vld [vmem:[%s209_s1] sm:$0xff]  ;;  %s130_s1 = smov [#allocation2]  }
   0xc   :  { %37 = vmatpush.msra.mxu0 %v26_v5  ;;  %v15_v16 = vld [vmem:[%s208_s0] sm:$0xff]  ;;  %s89_s21 = sshll.u32 %s130_s1, 4  ;;  %s90_s21 = int_to_ptr.vmem [resolvable:$true] %s89_s21 }
   0xd   :  { %v53_v17 = vld [vmem:[%s210_s2] sm:$0xff] }
   0xe   :  { %38 = vmatpush.msra.mxu0 %v25_v6  ;;  %73 = vmatpush.msra.mxu1 %v53_v17 }
  0x10   :  { %39 = vmatpush.msra.mxu0 %v24_v7 }
  0x12   :  { %40 = vmatpush.msra.mxu0 %v23_v8 }
  0x14   :  { %41 = vmatpush.msra.mxu0 %v22_v9 }
  0x16   :  { %42 = vmatpush.msra.mxu0 %v21_v10 }
  0x18   :  { %43 = vmatpush.msra.mxu0 %v20_v11 }
  0x1a   :  { %44 = vmatpush.msra.mxu0 %v19_v12 }
  0x1c   :  { %45 = vmatpush.msra.mxu0 %v18_v13 }
  0x1e   :  { %46 = vmatpush.msra.mxu0 %v17_v14 }
  0x20   :  { %47 = vmatpush.msra.mxu0 %v16_v15 }
  0x21   :  { %48 = vmatmul.f32.vlgmr.msra.gmra.mxu0 %v15_v16 }
  0x9e   :  { %v49_v18 = vpop.f32.mrf.mxu0 }
  0x9f   :  { %v52_v19 = vmax.f32 %v49_v18, 0.0 }
  0xa1   :  { %100 = vmatmul.msk.f32.vlgmr.msra.gmra.mxu1 %vm54_vm0, %v52_v19 }
 0x11e   :  { %v75_v20 = vpop.f32.mrf.mxu1 }
 0x11f   :  { %v78_v21 = vmul.f32 0.5, %v75_v20 }
 0x121   :  { %102 = vtanh.f32 %v78_v21 }
 0x127   :  { %v103_v22 = vpop.eup %102 }
 0x128   :  { %v80_v23 = vmul.f32 0.5, %v103_v22 }
 0x12a   :  { %v81_v24 = vadd.f32 0.5, %v80_v23 }
 0x12c   :  { %v82_v25 = vmul.f32 %v81_v24, %v15_v16 }
 0x12e   :  { %83 = vst [vmem:[#allocation2] sm:$0xff] %v82_v25 }
 0x12f   :  { %94 = dma.vmem_to_hbm [thread:$0]  %s90_s21, 128, %s92_s23, [#allocation3]  }
 0x130   :  { %128 = dma.done.wait [#allocation3], 128  }
 0x131   :  { %129 = vsyncadd [#allocation3], 4294967168 }
 0x132   :  { %99 = vsyncpa [#allocation3], 1 }

</bundles_post_ra>
